<compile_context>
chip_gen: v5e
topology: v5e:2x2
jax: 0.10.0
libtpu: 0.0.40
codegen_flags: <defaults>
</compile_context>

<pallas_src>
import functools

import jax
import jax.numpy as jnp
from jax.experimental import pallas as pl
from jax.experimental.pallas import tpu as pltpu

LANES = 128
SUBLANES = 8
_VREG_ELEMS = SUBLANES * LANES  # 1024 elements = one f32 vreg tile


def _device_kind():
    try:
        return jax.devices()[0].device_kind.lower()
    except Exception:  # pragma: no cover - defensive
        return ""


def _default_tile_rows(kind):
    """Baseline (f32) rows per grid step; input block = tile_rows x 128."""
    if "v7" in kind:
        return 8192   # 4 MiB/block f32 -> 16 MiB double-buffered (64 MiB chip)
    if "v6" in kind:
        return 8192   # 4 MiB/block f32
    if "v5" in kind:
        return 4096   # 2 MiB/block f32
    return 8192


def _vmem_limit_bytes(kind, per_block_bytes):
    """Scoped VMEM: 2 inputs x 2 double-buffers + headroom, capped per chip."""
    needed = 4 * per_block_bytes + (4 << 20)
    cap = (48 << 20) if "v7" in kind else (100 << 20)  # v7x: 64 MiB physical
    return int(min(max(needed, 32 << 20), cap))


def _sq_diff_partials_kernel(x_ref, y_ref, o_ref, *, tile_rows, rows, masked):
    """Per-tile partial sums of (x - y)^2 folded into an (8, 128) slab."""
    d = x_ref[...].astype(jnp.float32) - y_ref[...].astype(jnp.float32)
    sq = d * d

    def _fold(v):
        # (tile_rows, 128) -> (8, 128): pure VPU vreg adds, no cross-lane work.
        return v.reshape(tile_rows // SUBLANES, SUBLANES, LANES).sum(axis=0)

    if not masked:
        o_ref[0] = _fold(sq)
    else:
        i = pl.program_id(0)
        last = pl.num_programs(0) - 1

        @pl.when(i != last)
        def _():
            o_ref[0] = _fold(sq)

        @pl.when(i == last)  # only the ragged final tile pays for the mask
        def _():
            row = jax.lax.broadcasted_iota(jnp.int32, (tile_rows, LANES), 0)
            valid = (i * tile_rows + row) < rows
            o_ref[0] = _fold(jnp.where(valid, sq, 0.0))


def inverse_psnr_loss(x, y, max_pixel_value=1.0, epsilon=1e-8, tile_rows=None):
    assert x.shape == y.shape, "input and target must have the same shape"
    n_elems = int(x.size)
    assert n_elems > 0

    xf = jnp.ravel(x)
    yf = jnp.ravel(y)

    # Split off any sub-vreg (<1024-element) tail: it is summed as a tiny XLA
    # op rather than forcing a full-array padded copy of both inputs.
    rem = n_elems % _VREG_ELEMS
    main_len = n_elems - rem

    tail_sum = jnp.float32(0.0)
    if rem:
        dt = xf[main_len:].astype(jnp.float32) - yf[main_len:].astype(jnp.float32)
        tail_sum = jnp.sum(dt * dt)

    if main_len == 0:
        sum_sq = tail_sum
    else:
        rows = main_len // LANES               # multiple of 8
        x2 = xf[:main_len].reshape(rows, LANES)
        y2 = yf[:main_len].reshape(rows, LANES)

        kind = _device_kind()
        itemsize = jnp.dtype(x.dtype).itemsize
        if tile_rows is None:
            tile_rows = _default_tile_rows(kind)
            # Keep HBM bytes per grid step constant for narrow dtypes
            # (bf16 -> 2x rows, fp8 -> 4x rows). Stays a multiple of 8.
            tile_rows *= max(1, 4 // max(1, itemsize))
        tile_rows = min(tile_rows, rows)       # both are multiples of 8

        grid = pl.cdiv(rows, tile_rows)
        masked = (rows % tile_rows) != 0       # static: only ragged grids mask

        kernel = functools.partial(
            _sq_diff_partials_kernel,
            tile_rows=tile_rows, rows=rows, masked=masked)

        per_block_bytes = tile_rows * LANES * itemsize

        partials = pl.pallas_call(
            kernel,
            out_shape=jax.ShapeDtypeStruct((grid, SUBLANES, LANES), jnp.float32),
            grid_spec=pltpu.PrefetchScalarGridSpec(
                num_scalar_prefetch=0,
                grid=(grid,),
                in_specs=[
                    pl.BlockSpec((tile_rows, LANES), lambda i: (i, 0)),
                    pl.BlockSpec((tile_rows, LANES), lambda i: (i, 0)),
                ],
                out_specs=pl.BlockSpec((1, SUBLANES, LANES), lambda i: (i, 0, 0)),
            ),
            compiler_params=pltpu.CompilerParams(
                dimension_semantics=("parallel",),
                vmem_limit_bytes=_vmem_limit_bytes(kind, per_block_bytes),
                # Let XLA fuse the ravel/reshape producers into the kernel's
                # input fetch instead of materializing a relayout copy in HBM.
                allow_input_fusion=[True, True],
            ),
            cost_estimate=pl.CostEstimate(
                flops=3 * main_len,
                transcendentals=0,
                bytes_accessed=2 * main_len * itemsize + grid * _VREG_ELEMS * 4,
            ),
        )(x2, y2)

        # Tiny epilogue on the (grid, 8, 128) partials: ordinary XLA ops.
        sum_sq = jnp.sum(partials) + tail_sum

    mse = sum_sq / jnp.float32(n_elems)
    psnr = 20.0 * jnp.log10(jnp.float32(max_pixel_value) / jnp.sqrt(mse))
    return 1.0 / (psnr + jnp.float32(epsilon))


def _reference(x, y, max_pixel_value=1.0, epsilon=1e-8):
    mse = jnp.mean((x.astype(jnp.float32) - y.astype(jnp.float32)) ** 2)
    psnr = 20.0 * jnp.log10(max_pixel_value / jnp.sqrt(mse))
    return 1.0 / (psnr + epsilon)


if __name__ == "__main__":
    key = jax.random.PRNGKey(0)
    k1, k2 = jax.random.split(key)
    # NCHW inputs, as the PyTorch module would receive.
    x = jax.random.uniform(k1, (2, 4, 16, 16), dtype=jnp.float32)
    target = jax.random.uniform(k2, (2, 4, 16, 16), dtype=jnp.float32)

    loss = jax.block_until_ready(inverse_psnr_loss(x, target))

    ref = _reference(x, target)
    assert jnp.allclose(loss, ref, rtol=1e-5, atol=1e-6), (loss, ref)
    print("KERNEL_OK")
</pallas_src>

<mosaic_0001>
module attributes {stable_mosaic.version = 11 : i64} {
  func.func @_sq_diff_partials_kernel(%arg0: i32, %arg1: memref<16x128xf32, #tpu.memory_space<vmem>>, %arg2: memref<16x128xf32, #tpu.memory_space<vmem>>, %arg3: memref<1x8x128xf32, #tpu.memory_space<vmem>>) attributes {dimension_semantics = [#tpu.dimension_semantics<parallel>], iteration_bounds = array<i64: 1>, scalar_prefetch = 0 : i64, scratch_operands = 0 : i64, tpu.core_type = #tpu.core_type<tc>, window_params = [{transform_indices = @transform_0, window_bounds = array<i64: 16, 128>}, {transform_indices = @transform_1, window_bounds = array<i64: 16, 128>}, {transform_indices = @transform_2, window_bounds = array<i64: 1, 8, 128>}]} {
    %c0 = arith.constant 0 : index
    %c0_0 = arith.constant 0 : index
    %0 = vector.load %arg1[%c0, %c0_0] : memref<16x128xf32, #tpu.memory_space<vmem>>, vector<16x128xf32>
    %c0_1 = arith.constant 0 : index
    %c0_2 = arith.constant 0 : index
    %1 = vector.load %arg2[%c0_1, %c0_2] : memref<16x128xf32, #tpu.memory_space<vmem>>, vector<16x128xf32>
    %2 = arith.subf %0, %1 : vector<16x128xf32>
    %3 = arith.mulf %2, %2 : vector<16x128xf32>
    %4 = vector.shape_cast %3 : vector<16x128xf32> to vector<2x8x128xf32>
    %cst = arith.constant dense<0.000000e+00> : vector<8x128xf32>
    %5 = vector.multi_reduction <add>, %4, %cst [0] : vector<2x8x128xf32> to vector<8x128xf32>
    %c0_3 = arith.constant 0 : index
    %c0_4 = arith.constant 0 : index
    %c0_5 = arith.constant 0 : index
    %6 = vector.load %arg3[%c0_3, %c0_4, %c0_5] : memref<1x8x128xf32, #tpu.memory_space<vmem>>, vector<1x8x128xf32>
    %7 = vector.shape_cast %6 : vector<1x8x128xf32> to vector<8x128xf32>
    %8 = vector.shape_cast %5 : vector<8x128xf32> to vector<1x8x128xf32>
    tpu.vector_store %arg3[%c0_3, %c0_4, %c0_5], %8 {strides = array<i32>} : memref<1x8x128xf32, #tpu.memory_space<vmem>>, vector<1x8x128xf32>,
    return
  }
  func.func @transform_0(%arg0: i32) -> (i32, i32) {
    %c0_i32 = arith.constant 0 : i32
    %c0_i32_0 = arith.constant 0 : i32
    return %arg0, %c0_i32 : i32, i32
  }
  func.func @transform_1(%arg0: i32) -> (i32, i32) {
    %c0_i32 = arith.constant 0 : i32
    %c0_i32_0 = arith.constant 0 : i32
    return %arg0, %c0_i32 : i32, i32
  }
  func.func @transform_2(%arg0: i32) -> (i32, i32, i32) {
    %c0_i32 = arith.constant 0 : i32
    %c0_i32_0 = arith.constant 0 : i32
    %c0_i32_1 = arith.constant 0 : i32
    return %arg0, %c0_i32, %c0_i32_0 : i32, i32, i32
  }
}

</mosaic_0001>

<bundles_post_ra>
// kernel: tpu_custom_call.1
= control target key start
LH: loop header
LB: loop body
LE: loop exit
PB: predicated region body
PF: predicated region fallthrough
CT: control target
= control target key end

     0   :  { %7 = vsyncpa [#allocation3], 0  ;;  %s184_s0 = inlined_call_operand.hbm [shape: f32[16,128], index: 0, kind: input, shape index: {}]   ;;  %s185_s1 = inlined_call_operand.hbm [shape: f32[16,128], index: 1, kind: input, shape index: {}]   ;;  %s186_s2 = inlined_call_operand.hbm [shape: f32[1,8,128], index: 2, kind: output, shape index: {}]  }
   0x1   :  { %8 = vsyncpa [#allocation6], 0 }
   0x2   :  { %9 = vsyncpa [#allocation4], 0  ;;  %s14_s11 = sshll.u32 %s184_s0, 4  ;;  %s155_s12 = smov [#allocation2]   ;;  %s15_s11 = int_to_ptr.hbm [resolvable:$true] %s14_s11 }
   0x3   :  { %s16_s13 = sshll.u32 %s155_s12, 4  ;;  %s27_s16 = sshll.u32 %s185_s1, 4  ;;  %s17_s13 = int_to_ptr.vmem [resolvable:$true] %s16_s13  ;;  %s28_s16 = int_to_ptr.hbm [resolvable:$true] %s27_s16 }
   0x4   :  { %s156_s17 = smov 128   ;;  %s157_s18 = smov 8  }
   0x5   :  { %22 = dma.hbm_to_vmem [thread:$0]  %s15_s11, 256, %s17_s13, [#allocation3], %s156_s17, %s156_s17, %s157_s18  }
   0x6   :  { %s158_s19 = smov [#allocation5]  }
   0x7   :  { %s29_s20 = sshll.u32 %s158_s19, 4  ;;  %s30_s20 = int_to_ptr.vmem [resolvable:$true] %s29_s20 }
   0x8   :  { %35 = dma.hbm_to_vmem [thread:$0]  %s28_s16, 256, %s30_s20, [#allocation6], %s156_s17, %s156_s17, %s157_s18  }
   0x9   :  { %149 = dma.done.wait [#allocation3], 256  }
   0xa   :  { %150 = vsyncadd [#allocation3], 4294967040 }
   0xb   :  { %151 = dma.done.wait [#allocation6], 256  }
   0xc   :  { %152 = vsyncadd [#allocation6], 4294967040  ;;  %v44_v0 = vld [vmem:[#allocation2] sm:$0xff]  ;;  %v45_v1 = vld [vmem:[#allocation2 + $0x8] sm:$0xff]  ;;  %s159_s0 = smov [#allocation7]   ;;  %s61_s23 = sshll.u32 %s186_s2, 4  ;;  %s62_s23 = int_to_ptr.hbm [resolvable:$true] %s61_s23 }
   0xd   :  { %v46_v2 = vld [vmem:[#allocation5] sm:$0xff]  ;;  %v47_v3 = vld [vmem:[#allocation5 + $0x8] sm:$0xff]  ;;  %s59_s1 = sshll.u32 %s159_s0, 4  ;;  %s60_s1 = int_to_ptr.vmem [resolvable:$true] %s59_s1 }
   0xe   :  { %v48_v4 = vsub.f32 %v44_v0, %v46_v2  ;;  %v49_v5 = vsub.f32 %v45_v1, %v47_v3 }
  0x10   :  { %v50_v6 = vmul.f32 %v48_v4, %v48_v4  ;;  %v51_v7 = vmul.f32 %v49_v5, %v49_v5 }
  0x12   :  { %v52_v8 = vadd.f32 %v51_v7, %v50_v6 }
  0x14   :  { %53 = vst [vmem:[#allocation7] sm:$0xff] %v52_v8 }
  0x15   :  { %64 = dma.vmem_to_hbm [thread:$0]  %s60_s1, 128, %s62_s23, [#allocation4]  }
  0x16   :  { %153 = dma.done.wait [#allocation4], 128  }
  0x17   :  { %154 = vsyncadd [#allocation4], 4294967168 }
  0x18   :  { %69 = vsyncpa [#allocation3], 1 }
  0x19   :  { %70 = vsyncpa [#allocation6], 1 }
  0x1a   :  { %71 = vsyncpa [#allocation4], 1 }

</bundles_post_ra>
